<compile_context>
chip_gen: v7x
topology: tpu7x:2x2x1
jax: 0.10.0
libtpu: 0.0.40
codegen_flags: <defaults>
</compile_context>

<pallas_src>
import math
from collections import OrderedDict

import jax
import jax.numpy as jnp
from jax.experimental import pallas as pl
from jax.experimental.pallas import tpu as pltpu

_LANE = 128
_SUBLANE = 8
_SQRT_2_OVER_PI = 0.7978845608028654
_TILE_VMEM_BUDGET = 8 << 20  # budget for double-buffered (x, out) row tiles


def _round_up(n: int, m: int) -> int:
    return ((n + m - 1) // m) * m


# ---------------------------------------------------------------------------
# Fused kernel: (x @ W1_all + b1) -> tanh-GELU -> (@ W2_blockdiag + b2)
# ---------------------------------------------------------------------------
def _fused_heads_kernel(x_ref, w1_ref, b1_ref, w2_ref, b2_ref, out_ref):
    # First linear layer over all heads at once (MXU, bf16 in / f32 accumulate).
    x = x_ref[...].astype(w1_ref.dtype)
    h = jnp.dot(x, w1_ref[...], preferred_element_type=jnp.float32) + b1_ref[...]
    # tanh-approximate GELU: the tanh lands on the EUP slot (own bundle slot),
    # keeping the VALU free.  All VPU math stays f32 (v5e has no bf16 VALU).
    h = 0.5 * h * (1.0 + jnp.tanh(_SQRT_2_OVER_PI * (h + 0.044715 * (h * h * h))))
    # Second linear layer: block-diagonal weight slab -> per-head outputs,
    # already laid out in concatenation order along the lane axis.
    y = jnp.dot(h.astype(w2_ref.dtype), w2_ref[...],
                preferred_element_type=jnp.float32) + b2_ref[...]
    out_ref[...] = y.astype(out_ref.dtype)


# ---------------------------------------------------------------------------
# Parameter init (shapes mirror PredictorHeads.__init__, n_layers=1)
# ---------------------------------------------------------------------------
def init_predictor_heads_params(key, input_dim, var_name_to_output_dim, n_layers=1):
    assert n_layers == 1, "This synthetic script implements the n_layers=1 case."
    params = OrderedDict()
    for name, out_dim in var_name_to_output_dim.items():
        hidden_dim = int((input_dim + out_dim) / 2)
        key, k1, k2, k3, k4 = jax.random.split(key, 5)
        lim1 = 1.0 / math.sqrt(input_dim)
        lim2 = 1.0 / math.sqrt(hidden_dim)
        params[name] = {
            "w1": jax.random.uniform(k1, (input_dim, hidden_dim), jnp.float32, -lim1, lim1),
            "b1": jax.random.uniform(k2, (1, hidden_dim), jnp.float32, -lim1, lim1),
            "w2": jax.random.uniform(k3, (hidden_dim, out_dim), jnp.float32, -lim2, lim2),
            "b2": jax.random.uniform(k4, (1, out_dim), jnp.float32, -lim2, lim2),
        }
    return params


# ---------------------------------------------------------------------------
# Pack all heads into lane-padded slabs (done once, outside the kernel).
# Only the lane/output axes (hidden, out) are padded to 128; the contraction
# axis K is left unpadded so x needs no wrapper-side padding at all.
# ---------------------------------------------------------------------------
def pack_predictor_heads(params, input_dim, weight_dtype=jnp.bfloat16):
    hidden_dims = [p["w1"].shape[1] for p in params.values()]
    out_dims = [p["w2"].shape[1] for p in params.values()]
    H = sum(hidden_dims)
    O = sum(out_dims)

    H_pad = _round_up(H, _LANE)
    O_pad = _round_up(O, _LANE)

    w1 = jnp.zeros((input_dim, H_pad), weight_dtype)
    b1 = jnp.zeros((1, H_pad), jnp.float32)
    w2 = jnp.zeros((H_pad, O_pad), weight_dtype)  # block-diagonal, zeros elsewhere
    b2 = jnp.zeros((1, O_pad), jnp.float32)

    out_slices = OrderedDict()
    h_off, o_off = 0, 0
    for name, p in params.items():
        hh = p["w1"].shape[1]
        oh = p["w2"].shape[1]
        w1 = w1.at[:, h_off:h_off + hh].set(p["w1"].astype(weight_dtype))
        b1 = b1.at[:, h_off:h_off + hh].set(p["b1"])
        w2 = w2.at[h_off:h_off + hh, o_off:o_off + oh].set(p["w2"].astype(weight_dtype))
        b2 = b2.at[:, o_off:o_off + oh].set(p["b2"])
        out_slices[name] = (o_off, oh)
        h_off += hh
        o_off += oh

    return {
        "w1": w1, "b1": b1, "w2": w2, "b2": b2,
        "input_dim": input_dim, "out_dim": O,
        "H_pad": H_pad, "O_pad": O_pad,
        "out_slices": out_slices,
    }


def _choose_row_tile(batch, feature_in, lanes_out, itemsize, max_rows):
    tile_b = min(_round_up(batch, _SUBLANE), max_rows)
    # v7x has 2 TensorCores: ensure >= 2 grid steps when there is work to split.
    if batch >= 2 * _SUBLANE and pl.cdiv(batch, tile_b) < 2:
        tile_b = _round_up(pl.cdiv(batch, 2), _SUBLANE)
    # Keep the double-buffered (x, out) row tiles inside a modest VMEM budget.
    bytes_per_row = 2 * (feature_in * itemsize + lanes_out * 4)
    row_cap = max(_SUBLANE, (_TILE_VMEM_BUDGET // bytes_per_row) // _SUBLANE * _SUBLANE)
    return max(_SUBLANE, min(tile_b, row_cap))


# ---------------------------------------------------------------------------
# Fused forward: one pallas_call, batch grid, weights resident in VMEM.
# Returns the lane-padded (B, O_pad) output; callers slice what they need.
# ---------------------------------------------------------------------------
def fused_predictor_heads_forward(packed, hidden_input, *, max_rows_per_tile=1024):
    B, K = hidden_input.shape
    assert K == packed["input_dim"]
    H_pad, O_pad = packed["H_pad"], packed["O_pad"]
    w1, b1, w2, b2 = packed["w1"], packed["b1"], packed["w2"], packed["b2"]

    itemsize = hidden_input.dtype.itemsize
    tile_b = _choose_row_tile(B, K, O_pad, itemsize, max_rows_per_tile)
    grid = (pl.cdiv(B, tile_b),)

    # VMEM headroom: resident weight slabs + double-buffered row tiles.
    weight_bytes = (w1.size * w1.dtype.itemsize + w2.size * w2.dtype.itemsize
                    + b1.size * 4 + b2.size * 4)
    tile_bytes = tile_b * (K * itemsize + O_pad * 4)
    vmem_needed = 2 * (weight_bytes + tile_bytes)
    vmem_limit = int(min(max(3 * vmem_needed // 2, 32 << 20), 64 << 20))

    flops = 2 * B * (K * H_pad + H_pad * O_pad)
    bytes_accessed = (B * K * itemsize + weight_bytes + B * O_pad * itemsize)
    cost = pl.CostEstimate(flops=int(flops),
                           transcendentals=int(B * H_pad),
                           bytes_accessed=int(bytes_accessed))

    out = pl.pallas_call(
        _fused_heads_kernel,
        out_shape=jax.ShapeDtypeStruct((B, O_pad), hidden_input.dtype),
        grid=grid,
        in_specs=[
            # x: tiled over batch, K left at its full (unpadded) extent.
            pl.BlockSpec((tile_b, K), lambda i: (i, 0)),
            # Weight / bias slabs: constant block index -> VMEM-resident.
            pl.BlockSpec((K, H_pad), lambda i: (0, 0)),
            pl.BlockSpec((1, H_pad), lambda i: (0, 0)),
            pl.BlockSpec((H_pad, O_pad), lambda i: (0, 0)),
            pl.BlockSpec((1, O_pad), lambda i: (0, 0)),
        ],
        out_specs=pl.BlockSpec((tile_b, O_pad), lambda i: (i, 0)),
        compiler_params=pltpu.CompilerParams(
            dimension_semantics=("parallel",),   # v7x: shard batch over 2 TCs
            vmem_limit_bytes=vmem_limit),
        cost_estimate=cost,
    )(hidden_input, w1, b1, w2, b2)
    return out  # (B, O_pad): lane padding stripped by the callers below


def predictor_heads_forward(packed, hidden_input, as_dict=False):
    """Equivalent of PredictorHeads.forward with separate_heads=True."""
    out_padded = fused_predictor_heads_forward(packed, hidden_input)
    if not as_dict:
        return out_padded[:, :packed["out_dim"]]
    # Slice per-head outputs directly from the padded slab (no extra copy).
    name_to_prediction = OrderedDict()
    for name, (off, width) in packed["out_slices"].items():
        name_to_prediction[name] = out_padded[:, off:off + width]
    return name_to_prediction


# ---------------------------------------------------------------------------
# Pure-JAX reference (per-head, unpadded, f32 exact GELU) for correctness
# ---------------------------------------------------------------------------
def _reference_forward(params, hidden_input):
    outs = []
    for p in params.values():
        h = hidden_input @ p["w1"] + p["b1"]
        h = jax.nn.gelu(h, approximate=False)
        outs.append(h @ p["w2"] + p["b2"])
    return jnp.concatenate(outs, axis=-1)


if __name__ == "__main__":
    key = jax.random.PRNGKey(0)
    key, k_x, k_x2 = jax.random.split(key, 3)

    # Small shapes consistent with the module: 1D hidden representation/sample.
    batch = 8
    input_dim = 32
    var_name_to_output_dim = {"rsuc": 16, "rsdc": 16, "hrsc": 8}
    expected_out_dim = sum(var_name_to_output_dim.values())

    hidden_input = jax.random.normal(k_x, (batch, input_dim), jnp.float32)
    params = init_predictor_heads_params(key, input_dim, var_name_to_output_dim)
    packed = pack_predictor_heads(params, input_dim)

    # bf16 MXU + tanh-GELU vs f32/erf reference -> loosened tolerance.
    ATOL = RTOL = 3e-2

    joint_output = predictor_heads_forward(packed, hidden_input, as_dict=False)
    joint_output = jax.block_until_ready(joint_output)
    assert joint_output.shape == (batch, expected_out_dim), joint_output.shape

    ref = _reference_forward(params, hidden_input)
    assert jnp.allclose(joint_output, ref, atol=ATOL, rtol=RTOL), \
        float(jnp.max(jnp.abs(joint_output - ref)))

    # as_dict path: per-head slices must match the per-head reference too.
    preds = predictor_heads_forward(packed, hidden_input, as_dict=True)
    off = 0
    for name, out_dim in var_name_to_output_dim.items():
        assert preds[name].shape == (batch, out_dim)
        assert jnp.allclose(preds[name], ref[:, off:off + out_dim], atol=ATOL, rtol=RTOL)
        off += out_dim

    # Ragged-batch path: grid > 1 with a partial final tile (no batch padding).
    batch2 = 20
    hidden_input2 = jax.random.normal(k_x2, (batch2, input_dim), jnp.float32)
    joint2 = predictor_heads_forward(packed, hidden_input2, as_dict=False)
    joint2 = jax.block_until_ready(joint2)
    ref2 = _reference_forward(params, hidden_input2)
    assert joint2.shape == (batch2, expected_out_dim)
    assert jnp.allclose(joint2, ref2, atol=ATOL, rtol=RTOL), \
        float(jnp.max(jnp.abs(joint2 - ref2)))

    print("KERNEL_OK")
</pallas_src>

<mosaic_0001>
module attributes {stable_mosaic.version = 11 : i64} {
  func.func @_fused_heads_kernel(%arg0: i32, %arg1: memref<8x32xf32, #tpu.memory_space<vmem>>, %arg2: memref<32x128xbf16, #tpu.memory_space<vmem>>, %arg3: memref<1x128xf32, #tpu.memory_space<vmem>>, %arg4: memref<128x128xbf16, #tpu.memory_space<vmem>>, %arg5: memref<1x128xf32, #tpu.memory_space<vmem>>, %arg6: memref<8x128xf32, #tpu.memory_space<vmem>>) attributes {dimension_semantics = [#tpu.dimension_semantics<parallel>], iteration_bounds = array<i64: 1>, scalar_prefetch = 0 : i64, scratch_operands = 0 : i64, tpu.core_type = #tpu.core_type<tc>, window_params = [{transform_indices = @transform_0, window_bounds = array<i64: 8, 32>}, {pipeline_mode = #tpu.pipeline_mode<synchronous>, transform_indices = @transform_1, window_bounds = array<i64: 32, 128>}, {pipeline_mode = #tpu.pipeline_mode<synchronous>, transform_indices = @transform_2, window_bounds = array<i64: 1, 128>}, {pipeline_mode = #tpu.pipeline_mode<synchronous>, transform_indices = @transform_3, window_bounds = array<i64: 128, 128>}, {pipeline_mode = #tpu.pipeline_mode<synchronous>, transform_indices = @transform_4, window_bounds = array<i64: 1, 128>}, {transform_indices = @transform_5, window_bounds = array<i64: 8, 128>}]} {
    %c0 = arith.constant 0 : index
    %c0_0 = arith.constant 0 : index
    %0 = vector.load %arg1[%c0, %c0_0] : memref<8x32xf32, #tpu.memory_space<vmem>>, vector<8x32xf32>
    %1 = arith.truncf %0 : vector<8x32xf32> to vector<8x32xbf16>
    %c0_1 = arith.constant 0 : index
    %c0_2 = arith.constant 0 : index
    %2 = vector.load %arg2[%c0_1, %c0_2] : memref<32x128xbf16, #tpu.memory_space<vmem>>, vector<32x128xbf16>
    %cst = arith.constant dense<0.000000e+00> : vector<8x128xf32>
    %3 = tpu.matmul %1, %2, %cst {dimension_numbers = #tpu.dot_dimension_numbers<[1], [0], [0], [1], [0, 0, 1, 1], [], []>} : vector<8x32xbf16>, vector<32x128xbf16>, vector<8x128xf32> -> vector<8x128xf32>
    %c0_3 = arith.constant 0 : index
    %c0_4 = arith.constant 0 : index
    %4 = vector.load %arg3[%c0_3, %c0_4] : memref<1x128xf32, #tpu.memory_space<vmem>>, vector<1x128xf32>
    %5 = vector.broadcast %4 : vector<1x128xf32> to vector<8x128xf32>
    %6 = arith.addf %3, %5 : vector<8x128xf32>
    %cst_5 = arith.constant 5.000000e-01 : f32
    %7 = vector.broadcast %cst_5 : f32 to vector<8x128xf32>
    %8 = arith.mulf %7, %6 : vector<8x128xf32>
    %9 = arith.mulf %6, %6 : vector<8x128xf32>
    %10 = arith.mulf %9, %6 : vector<8x128xf32>
    %cst_6 = arith.constant 4.471500e-02 : f32
    %11 = vector.broadcast %cst_6 : f32 to vector<8x128xf32>
    %12 = arith.mulf %11, %10 : vector<8x128xf32>
    %13 = arith.addf %6, %12 : vector<8x128xf32>
    %cst_7 = arith.constant 0.797884583 : f32
    %14 = vector.broadcast %cst_7 : f32 to vector<8x128xf32>
    %15 = arith.mulf %14, %13 : vector<8x128xf32>
    %16 = math.tanh %15 : vector<8x128xf32>
    %cst_8 = arith.constant 1.000000e+00 : f32
    %17 = vector.broadcast %cst_8 : f32 to vector<8x128xf32>
    %18 = arith.addf %17, %16 : vector<8x128xf32>
    %19 = arith.mulf %8, %18 : vector<8x128xf32>
    %20 = arith.truncf %19 : vector<8x128xf32> to vector<8x128xbf16>
    %c0_9 = arith.constant 0 : index
    %c0_10 = arith.constant 0 : index
    %21 = vector.load %arg4[%c0_9, %c0_10] : memref<128x128xbf16, #tpu.memory_space<vmem>>, vector<128x128xbf16>
    %cst_11 = arith.constant dense<0.000000e+00> : vector<8x128xf32>
    %22 = tpu.matmul %20, %21, %cst_11 {dimension_numbers = #tpu.dot_dimension_numbers<[1], [0], [0], [1], [0, 0, 1, 1], [], []>} : vector<8x128xbf16>, vector<128x128xbf16>, vector<8x128xf32> -> vector<8x128xf32>
    %c0_12 = arith.constant 0 : index
    %c0_13 = arith.constant 0 : index
    %23 = vector.load %arg5[%c0_12, %c0_13] : memref<1x128xf32, #tpu.memory_space<vmem>>, vector<1x128xf32>
    %24 = vector.broadcast %23 : vector<1x128xf32> to vector<8x128xf32>
    %25 = arith.addf %22, %24 : vector<8x128xf32>
    %c0_14 = arith.constant 0 : index
    %c0_15 = arith.constant 0 : index
    %26 = vector.load %arg6[%c0_14, %c0_15] : memref<8x128xf32, #tpu.memory_space<vmem>>, vector<8x128xf32>
    tpu.vector_store %arg6[%c0_14, %c0_15], %25 {strides = array<i32>} : memref<8x128xf32, #tpu.memory_space<vmem>>, vector<8x128xf32>,
    return
  }
  func.func @transform_0(%arg0: i32) -> (i32, i32) {
    %c0_i32 = arith.constant 0 : i32
    %c0_i32_0 = arith.constant 0 : i32
    return %arg0, %c0_i32 : i32, i32
  }
  func.func @transform_1(%arg0: i32) -> (i32, i32) {
    %c0_i32 = arith.constant 0 : i32
    %c0_i32_0 = arith.constant 0 : i32
    %c0_i32_1 = arith.constant 0 : i32
    return %c0_i32, %c0_i32_0 : i32, i32
  }
  func.func @transform_2(%arg0: i32) -> (i32, i32) {
    %c0_i32 = arith.constant 0 : i32
    %c0_i32_0 = arith.constant 0 : i32
    %c0_i32_1 = arith.constant 0 : i32
    return %c0_i32, %c0_i32_0 : i32, i32
  }
  func.func @transform_3(%arg0: i32) -> (i32, i32) {
    %c0_i32 = arith.constant 0 : i32
    %c0_i32_0 = arith.constant 0 : i32
    %c0_i32_1 = arith.constant 0 : i32
    return %c0_i32, %c0_i32_0 : i32, i32
  }
  func.func @transform_4(%arg0: i32) -> (i32, i32) {
    %c0_i32 = arith.constant 0 : i32
    %c0_i32_0 = arith.constant 0 : i32
    %c0_i32_1 = arith.constant 0 : i32
    return %c0_i32, %c0_i32_0 : i32, i32
  }
  func.func @transform_5(%arg0: i32) -> (i32, i32) {
    %c0_i32 = arith.constant 0 : i32
    %c0_i32_0 = arith.constant 0 : i32
    return %arg0, %c0_i32 : i32, i32
  }
}

</mosaic_0001>

<bundles_post_ra>
// kernel: tpu_custom_call.1
= control target key start
LH: loop header
LB: loop body
LE: loop exit
PB: predicated region body
PF: predicated region fallthrough
CT: control target
= control target key end

     0   :  { %10 = vsyncpa [#allocation3], 0  ;;  %s533_s0 = inlined_call_operand.hbm [shape: f32[8,32], index: 0, kind: input, shape index: {}]   ;;  %s534_s1 = inlined_call_operand.hbm [shape: bf16[32,128], index: 1, kind: input, shape index: {}]   ;;  %s535_s2 = inlined_call_operand.vmem [shape: f32[1,128], index: 2, kind: input, shape index: {}]   ;;  %s536_s3 = inlined_call_operand.hbm [shape: bf16[128,128], index: 3, kind: input, shape index: {}]   ;;  %s537_s4 = inlined_call_operand.vmem [shape: f32[1,128], index: 4, kind: input, shape index: {}]   ;;  %s538_s5 = inlined_call_operand.hbm [shape: f32[8,128], index: 5, kind: output, shape index: {}]  }
   0x1   :  { %11 = vsyncpa [#allocation6], 0 }
   0x2   :  { %12 = vsyncpa [#allocation4], 0  ;;  %s435_s18 = smov [#allocation5]   ;;  %s341_s22 = scalar_lea.hbm %s534_s1, 256 }
   0x3   :  { %s28_s19 = sshll.u32 %s435_s18, 4  ;;  %p342_p0 = scmp.ne.s32.totalorder %s534_s1, %s341_s22  ;;  %s29_s19 = int_to_ptr.vmem [resolvable:$true] %s28_s19 }
   0x4   :  { %p345_p1 = scmp.lt.u32.totalorder %s341_s22, %s534_s1 }
   0x6   :  { %p347_p2 = pnand %p345_p1, %p342_p0 }
   0x8   :  { %350 = shalt.err (!%p347_p2)
}
   0x9   :  { %s351_s27 = scalar_lea.vmem %s29_s19, 256  ;;  %p356_p4 = scmp.lt.s32.totalorder %s29_s19, %s29_s19 }
   0xa   :  { %p352_p3 = scmp.ne.s32.totalorder %s29_s19, %s351_s27  ;;  %p357_p5 = scmp.lt.s32.totalorder %s351_s27, %s351_s27 }
   0xc   :  { %p358_p6 = por %p357_p5, %p356_p4 }
   0xe   :  { %p359_p7 = pnand %p358_p6, %p352_p3 }
  0x10   :  { %362 = shalt.err (!%p359_p7)
}
  0x11   :  { %s436_s28 = smov 64   ;;  %s437_s29 = smov 4  }
  0x12   :  { %34 = dma.hbm_to_vmem [thread:$0]  %s534_s1, 256, %s29_s19, [#allocation6], %s436_s28, %s436_s28, %s437_s29  }
  0x13   :  { %s438_s7 = smov [#allocation2]   ;;  %s439_s9 = smov [#allocation7]  }
  0x14   :  { %s19_s8 = sshll.u32 %s438_s7, 4  ;;  %s42_s10 = sshll.u32 %s439_s9, 4  ;;  %s20_s8 = int_to_ptr.vmem [resolvable:$true] %s19_s8  ;;  %s43_s10 = int_to_ptr.vmem [resolvable:$true] %s42_s10 }
  0x15   :  { %s363_s13 = scalar_lea.hbm %s533_s0, 128 }
  0x16   :  { %p364_p8 = scmp.ne.s32.totalorder %s533_s0, %s363_s13  ;;  %p367_p9 = scmp.lt.u32.totalorder %s363_s13, %s533_s0 }
  0x18   :  { %p369_p10 = pnand %p367_p9, %p364_p8 }
  0x1a   :  { %372 = shalt.err (!%p369_p10)
}
  0x1b   :  { %s373_s1 = scalar_lea.vmem %s20_s8, 128  ;;  %p378_p12 = scmp.lt.s32.totalorder %s20_s8, %s20_s8 }
  0x1c   :  { %p374_p11 = scmp.ne.s32.totalorder %s20_s8, %s373_s1  ;;  %p379_p13 = scmp.lt.s32.totalorder %s373_s1, %s373_s1 }
  0x1e   :  { %p380_p0 = por %p379_p13, %p378_p12 }
  0x20   :  { %p381_p1 = pnand %p380_p0, %p374_p11 }
  0x22   :  { %384 = shalt.err (!%p381_p1)
}
  0x23   :  { %22 = dma.hbm_to_vmem [thread:$0]  %s533_s0, 128, %s20_s8, [#allocation3]  }
  0x24   :  { %s385_s22 = scalar_lea.hbm %s536_s3, 1024 }
  0x25   :  { %p386_p2 = scmp.ne.s32.totalorder %s536_s3, %s385_s22  ;;  %p389_p3 = scmp.lt.u32.totalorder %s385_s22, %s536_s3 }
  0x27   :  { %p391_p4 = pnand %p389_p3, %p386_p2 }
  0x29   :  { %394 = shalt.err (!%p391_p4)
}
  0x2a   :  { %s395_s27 = scalar_lea.vmem %s43_s10, 1024  ;;  %p400_p6 = scmp.lt.s32.totalorder %s43_s10, %s43_s10 }
  0x2b   :  { %p396_p5 = scmp.ne.s32.totalorder %s43_s10, %s395_s27  ;;  %p401_p7 = scmp.lt.s32.totalorder %s395_s27, %s395_s27 }
  0x2d   :  { %p402_p8 = por %p401_p7, %p400_p6 }
  0x2f   :  { %p403_p9 = pnand %p402_p8, %p396_p5 }
  0x31   :  { %406 = shalt.err (!%p403_p9)
}
  0x32   :  { %48 = dma.hbm_to_vmem [thread:$0]  %s536_s3, 1024, %s43_s10, [#allocation6], %s436_s28, %s436_s28, %s437_s29  }
  0x33   :  { %429 = dma.done.wait [#allocation3], 128  }
  0x34   :  { %430 = vsyncadd [#allocation3], 4294967168 }
  0x35   :  { %431 = dma.done.wait [#allocation6], 1280  }
  0x36   :  { %432 = vsyncadd [#allocation6], 4294966016  ;;  %v440_v0 = vmov 0.0   ;;  %vm441_vm0 = vmmov 0   ;;  %v329_v1 = vld [vmem:[#allocation5] sm:$0xff]   ;;  %v330_v2 = vld [vmem:[#allocation5 + $0x8] sm:$0xff]  }
  0x37   :  { %293 = vmatprep.subr.bf16.mxu0 %v440_v0  ;;  %297 = vmatprep.mubr.msk.bf16.mxu0 %vm441_vm0, %v440_v0  ;;  %v61_v3 = vld [vmem:[#allocation2] sm:$0xff]  ;;  %vm86_vm1 = vcmask 261120   ;;  %v331_v4 = vld [vmem:[#allocation7] sm:$0xff]   ;;  %v333_v7 = vld [vmem:[#allocation7 + $0x10] sm:$0xff]  }
  0x38   :  { %301 = vmatprep.subr.bf16.mxu1 %v440_v0  ;;  %317 = vmatprep.mubr.msk.bf16.mxu1 %vm441_vm0, %v440_v0  ;;  %v62_v5 = vpack.c.bf16 %v61_v3, %v61_v3  ;;  %v332_v6 = vld [vmem:[#allocation7 + $0x8] sm:$0xff]   ;;  %v334_v8 = vld [vmem:[#allocation7 + $0x18] sm:$0xff]   ;;  %v335_v9 = vld [vmem:[#allocation7 + $0x20] sm:$0xff]  }
  0x39   :  { %294 = vmatpush3.bf16.msra.mxu0 %v329_v1  ;;  %302 = vmatpush3.bf16.msra.mxu1 %v331_v4  ;;  %v336_v10 = vld [vmem:[#allocation7 + $0x28] sm:$0xff]   ;;  %v337_v11 = vld [vmem:[#allocation7 + $0x30] sm:$0xff]   ;;  %v338_v12 = vld [vmem:[#allocation7 + $0x38] sm:$0xff]  }
  0x3a   :  { %295 = vmatprep.subr.bf16.mxu0 %v440_v0  ;;  %303 = vmatprep.subr.bf16.mxu1 %v440_v0  ;;  %v268_v13 = vld [vmem:[%s535_s2] ss:$0 sm:$0xff]  ;;  %s442_s2 = smov [#allocation8]  }
  0x3b   :  { %v272_v29 = vld [vmem:[%s537_s4] ss:$0 sm:$0xff]  ;;  %s258_s7 = sshll.u32 %s442_s2, 4  ;;  %s259_s7 = int_to_ptr.vmem [resolvable:$true] %s258_s7 }
  0x3c   :  { %s407_s8 = scalar_lea.vmem %s259_s7, 128  ;;  %p412_p11 = scmp.lt.s32.totalorder %s259_s7, %s259_s7 }
  0x3d   :  { %296 = vmatpush3.bf16.msra.mxu0 %v330_v2  ;;  %304 = vmatpush3.bf16.msra.mxu1 %v332_v6  ;;  %p408_p10 = scmp.ne.s32.totalorder %s259_s7, %s407_s8  ;;  %p413_p12 = scmp.lt.s32.totalorder %s407_s8, %s407_s8 }
  0x3e   :  { %305 = vmatprep.subr.bf16.mxu1 %v440_v0 }
  0x3f   :  { %p414_p13 = por %p413_p12, %p412_p11 }
  0x40   :  { %298 = vmatmul.mubr.msk.bf16.vlgmr.msra.gmra.mrb[0].mxu0 %vm86_vm1, %v62_v5 }
  0x41   :  { %306 = vmatpush3.bf16.msra.mxu1 %v333_v7  ;;  %p415_p0 = pnand %p414_p13, %p408_p10 }
  0x42   :  { %307 = vmatprep.subr.bf16.mxu1 %v440_v0 }
  0x45   :  { %308 = vmatpush3.bf16.msra.mxu1 %v334_v8 }
  0x46   :  { %309 = vmatprep.subr.bf16.mxu1 %v440_v0 }
  0x49   :  { %310 = vmatpush3.bf16.msra.mxu1 %v335_v9 }
  0x4a   :  { %311 = vmatprep.subr.bf16.mxu1 %v440_v0 }
  0x4d   :  { %312 = vmatpush3.bf16.msra.mxu1 %v336_v10 }
  0x4e   :  { %313 = vmatprep.subr.bf16.mxu1 %v440_v0 }
  0x51   :  { %314 = vmatpush3.bf16.msra.mxu1 %v337_v11 }
  0x52   :  { %315 = vmatprep.subr.bf16.mxu1 %v440_v0 }
  0x55   :  { %316 = vmatpush3.bf16.msra.mxu1 %v338_v12 }
 0x113   :  { %v124_v14 = vpop.f32.mrb[0].mxu0 }
 0x114   :  { %v125_v15 = vadd.f32 %v268_v13, %v124_v14  ;;  %v299_v16 = vpop.f32.mrb[1].mxu0 }
 0x115   :  { %v127_v17 = vpop.f32.mrb[2].mxu0 }
 0x116   :  { %v131_v18 = vmul.f32 %v125_v15, %v125_v15  ;;  %v300_v19 = vpop.f32.mrb[3].mxu0  ;;  %v130_v25 = vmul.f32 0.5, %v125_v15 }
 0x118   :  { %v132_v20 = vmul.f32 %v131_v18, %v125_v15 }
 0x11a   :  { %v133_v21 = vmul.f32 0.044715, %v132_v20 }
 0x11c   :  { %v134_v22 = vadd.f32 %v133_v21, %v125_v15 }
 0x11e   :  { %v135_v23 = vmul.f32 0.7978846, %v134_v22 }
 0x120   :  { %339 = vtanh.f32 %v135_v23 }
 0x12a   :  { %v340_v24 = vpop.eup %339 }
 0x12b   :  { %v137_v26 = vadd.f32 1.0, %v340_v24 }
 0x12d   :  { %v138_v27 = vmul.f32 %v137_v26, %v130_v25 }
 0x12f   :  { %v139_v28 = vpack.c.bf16 %v138_v27, %v138_v27 }
 0x131   :  { %318 = vmatmul.mubr.bf16.vlgmr.msra.gmra.mrb[0].mxu1 %v139_v28 }
 0x204   :  { %v245_v30 = vpop.f32.mrb[0].mxu1 }
 0x205   :  { %v246_v31 = vadd.f32 %v272_v29, %v245_v30  ;;  %v319_v32 = vpop.f32.mrb[1].mxu1 }
 0x206   :  { %v248_v33 = vpop.f32.mrb[2].mxu1 }
 0x207   :  { %251 = vst [vmem:[#allocation8] sm:$0xff] %v246_v31  ;;  %v320_v34 = vpop.f32.mrb[3].mxu1 }
 0x208   :  { %418 = shalt.err (!%p415_p0)
}
 0x209   :  { %s419_s4 = scalar_lea.hbm %s538_s5, 128 }
 0x20a   :  { %p420_p1 = scmp.ne.s32.totalorder %s538_s5, %s419_s4  ;;  %p423_p2 = scmp.lt.u32.totalorder %s419_s4, %s538_s5 }
 0x20c   :  { %p425_p3 = pnand %p423_p2, %p420_p1 }
 0x20e   :  { %428 = shalt.err (!%p425_p3)
}
 0x20f   :  { %261 = dma.vmem_to_hbm [thread:$0]  %s259_s7, 128, %s538_s5, [#allocation4]  }
 0x210   :  { %433 = dma.done.wait [#allocation4], 128  }
 0x211   :  { %434 = vsyncadd [#allocation4], 4294967168 }
 0x212   :  { %265 = vsyncpa [#allocation3], 1 }
 0x213   :  { %266 = vsyncpa [#allocation6], 1 }
 0x214   :  { %267 = vsyncpa [#allocation4], 1 }

</bundles_post_ra>
